<compile_context>
chip_gen: v7x
topology: tpu7x:2x2x1
jax: 0.10.0
libtpu: 0.0.40
codegen_flags: <defaults>
</compile_context>

<pallas_src>
import functools

import jax
import jax.numpy as jnp
from jax.experimental import pallas as pl
from jax.experimental.pallas import tpu as pltpu


def _pixel_unshuffle_kernel(x_ref, o_ref, xt_ref, *, scale, w, out_w, cb):
    """One (n, channel-block, row-tile) grid step.

    x_ref : (1, cb, th, scale*w)   row r of channel c holds the `scale`
                                   consecutive input rows that feed output row
                                   r, concatenated along the lane axis.
    o_ref : (1, cb*scale*scale, th, out_w)
    xt_ref: (scale*w, th)          scratch for one transposed channel tile.
    """
    for c in range(cb):
        # One XLU transpose turns the lane-axis (sx) deinterleave into a
        # sublane-strided read, which strided ref indexing handles directly.
        xt_ref[...] = jnp.transpose(x_ref[0, c])              # (scale*w, th)
        base = c * scale * scale
        for sy in range(scale):
            for sx in range(scale):
                # sublanes sy*w + sx, +scale, ...  -> (out_w, th)
                plane_t = xt_ref[pl.ds(sy * w + sx, out_w, stride=scale), :]
                # back to (th, out_w): oh on sublanes, ow on lanes
                o_ref[0, base + sy * scale + sx] = jnp.transpose(plane_t)


def _sublane_quantum(dtype):
    # Second-to-last block dim must be a multiple of this (or the full extent):
    # 8 for 4-byte, 16 for 2-byte, 32 for 1-byte dtypes.
    return max(8, 32 // jnp.dtype(dtype).itemsize)


def _vmem_capacity_bytes():
    # Per-TensorCore VMEM: 128 MiB on v5e/v6e, 64 MiB/TC on v7x.  Fall back to
    # the smallest (v7x) so a blind guess never over-subscribes.
    try:
        return int(pltpu.get_tpu_info().vmem_capacity_bytes)
    except Exception:
        return 64 << 20


def _choose_tiles(C, out_h, scale, W, dtype, *, target_tile_bytes=4 << 20):
    """Pick (channel block CB, row tile TH, vmem_limit_bytes)."""
    item = jnp.dtype(dtype).itemsize
    q = _sublane_quantum(dtype)
    row_bytes = scale * W * item            # one output row-group, one channel
    cap = _vmem_capacity_bytes()
    budget = min(int(cap * 0.6), 64 << 20)  # tiles + scratch footprint cap

    def footprint(cb, th):
        tile = cb * th * row_bytes
        # 2x double-buffered input + 2x double-buffered output + scratch.
        return 4 * tile + th * row_bytes

    # Row tile: the largest dtype-legal TH that fits the budget at CB=1.  TH
    # need not divide out_h (grid uses cdiv; Pallas masks the ragged tail).
    if out_h <= q:
        th = out_h                           # full extent: always layout-legal
    else:
        max_rows = max(q, budget // (5 * row_bytes))
        th = max(q, min((out_h // q) * q, (max_rows // q) * q))

    # Channel blocking: fuse channels until the per-step DMA is comfortably
    # large or the budget is hit.  CB divides C (no ragged channel blocks) and
    # is capped to bound in-kernel unrolling.
    max_cb = max(1, 256 // (scale * scale))
    cb = 1
    for d in sorted(d for d in range(1, C + 1) if C % d == 0):
        if d > max_cb or footprint(d, th) > budget:
            break
        cb = d
        if d * th * row_bytes >= target_tile_bytes:
            break

    vmem_limit = max(budget + (16 << 20), min(int(cap * 0.9), 96 << 20))
    return cb, th, int(vmem_limit)


def downsampling_shuffle(x, scale):
    """N,C,H,W -> N, C*scale**2, H//scale, W//scale (PyTorch pixel-unshuffle)."""
    N, C, H, W = x.shape
    assert H % scale == 0, 'Please Check input and scale'
    assert W % scale == 0, 'Please Check input and scale'
    if scale == 1:
        return x  # identity

    out_h, out_w = H // scale, W // scale
    out_c = C * scale * scale
    cb, th, vmem_limit = _choose_tiles(C, out_h, scale, W, x.dtype)

    # Free contiguous view: output-row-major grouping of input rows so every
    # grid step reads one fully contiguous HBM chunk.
    x_r = x.reshape(N, C, out_h, scale * W)

    kernel = functools.partial(_pixel_unshuffle_kernel,
                               scale=scale, w=W, out_w=out_w, cb=cb)

    out = pl.pallas_call(
        kernel,
        out_shape=jax.ShapeDtypeStruct((N, out_c, out_h, out_w), x.dtype),
        grid=(N, C // cb, pl.cdiv(out_h, th)),
        in_specs=[
            pl.BlockSpec((1, cb, th, scale * W), lambda n, c, t: (n, c, t, 0)),
        ],
        out_specs=pl.BlockSpec((1, cb * scale * scale, th, out_w),
                               lambda n, c, t: (n, c, t, 0)),
        scratch_shapes=[pltpu.VMEM((scale * W, th), x.dtype)],
        compiler_params=pltpu.CompilerParams(
            dimension_semantics=("parallel", "parallel", "parallel"),
            vmem_limit_bytes=vmem_limit),
    )(x_r)
    return out


def _reference(x, scale):
    """Pure-JAX mirror of the PyTorch module."""
    N, C, H, W = x.shape
    oh, ow = H // scale, W // scale
    v = x.reshape(N, C, oh, scale, ow, scale)
    v = jnp.transpose(v, (0, 1, 3, 5, 2, 4))
    return v.reshape(N, C * scale * scale, oh, ow)


if __name__ == "__main__":
    key = jax.random.PRNGKey(0)
    k1, k2 = jax.random.split(key)

    # Primary check: shapes implied by the module.  At this size all 4 channels
    # fuse into one grid step, exercising the new channel-blocking path.
    N, C, H, W = 2, 4, 16, 16
    scale = 2
    x = jax.random.normal(k1, (N, C, H, W), dtype=jnp.float32)
    out = jax.block_until_ready(downsampling_shuffle(x, scale))
    ref = _reference(x, scale)
    assert out.shape == (N, C * scale * scale, H // scale, W // scale)
    assert bool(jnp.array_equal(out, ref))

    # Secondary check: odd scale / odd channel count.
    x2 = jax.random.normal(k2, (1, 3, 12, 12), dtype=jnp.float32)
    out2 = jax.block_until_ready(downsampling_shuffle(x2, 3))
    assert bool(jnp.array_equal(out2, _reference(x2, 3)))

    print("KERNEL_OK")
</pallas_src>

<mosaic_0001>
module attributes {stable_mosaic.version = 11 : i64} {
  func.func @_pixel_unshuffle_kernel(%arg0: i32, %arg1: i32, %arg2: i32, %arg3: memref<1x4x8x32xf32, #tpu.memory_space<vmem>>, %arg4: memref<1x16x8x8xf32, #tpu.memory_space<vmem>>, %arg5: memref<32x8xf32, #tpu.memory_space<vmem>>) attributes {dimension_semantics = [#tpu.dimension_semantics<parallel>, #tpu.dimension_semantics<parallel>, #tpu.dimension_semantics<parallel>], iteration_bounds = array<i64: 2, 1, 1>, scalar_prefetch = 0 : i64, scratch_operands = 1 : i64, tpu.core_type = #tpu.core_type<tc>, window_params = [{transform_indices = @transform_0, window_bounds = array<i64: 1, 4, 8, 32>}, {transform_indices = @transform_1, window_bounds = array<i64: 1, 16, 8, 8>}]} {
    %c0 = arith.constant 0 : index
    %c0_0 = arith.constant 0 : index
    %c0_1 = arith.constant 0 : index
    %c0_2 = arith.constant 0 : index
    %0 = vector.load %arg3[%c0, %c0_0, %c0_1, %c0_2] : memref<1x4x8x32xf32, #tpu.memory_space<vmem>>, vector<1x1x8x32xf32>
    %1 = vector.shape_cast %0 : vector<1x1x8x32xf32> to vector<8x32xf32>
    %2 = tpu.transpose %1, [1, 0] : vector<8x32xf32> -> vector<32x8xf32>
    %c0_3 = arith.constant 0 : index
    %c0_4 = arith.constant 0 : index
    %3 = vector.load %arg5[%c0_3, %c0_4] : memref<32x8xf32, #tpu.memory_space<vmem>>, vector<32x8xf32>
    tpu.vector_store %arg5[%c0_3, %c0_4], %2 {strides = array<i32>} : memref<32x8xf32, #tpu.memory_space<vmem>>, vector<32x8xf32>,
    %c0_5 = arith.constant 0 : index
    %c0_6 = arith.constant 0 : index
    %4 = tpu.strided_load %arg5[%c0_5, %c0_6] {strides = array<i32: 2, 1>} : memref<32x8xf32, #tpu.memory_space<vmem>>, vector<8x8xf32>
    %5 = tpu.transpose %4, [1, 0] : vector<8x8xf32> -> vector<8x8xf32>
    %c0_7 = arith.constant 0 : index
    %c0_8 = arith.constant 0 : index
    %c0_9 = arith.constant 0 : index
    %c0_10 = arith.constant 0 : index
    %6 = vector.load %arg4[%c0_7, %c0_8, %c0_9, %c0_10] : memref<1x16x8x8xf32, #tpu.memory_space<vmem>>, vector<1x1x8x8xf32>
    %7 = vector.shape_cast %6 : vector<1x1x8x8xf32> to vector<8x8xf32>
    %8 = vector.shape_cast %5 : vector<8x8xf32> to vector<1x1x8x8xf32>
    tpu.vector_store %arg4[%c0_7, %c0_8, %c0_9, %c0_10], %8 {strides = array<i32>} : memref<1x16x8x8xf32, #tpu.memory_space<vmem>>, vector<1x1x8x8xf32>,
    %c1 = arith.constant 1 : index
    %c0_11 = arith.constant 0 : index
    %9 = tpu.strided_load %arg5[%c1, %c0_11] {strides = array<i32: 2, 1>} : memref<32x8xf32, #tpu.memory_space<vmem>>, vector<8x8xf32>
    %10 = tpu.transpose %9, [1, 0] : vector<8x8xf32> -> vector<8x8xf32>
    %c0_12 = arith.constant 0 : index
    %c1_13 = arith.constant 1 : index
    %c0_14 = arith.constant 0 : index
    %c0_15 = arith.constant 0 : index
    %11 = vector.load %arg4[%c0_12, %c1_13, %c0_14, %c0_15] : memref<1x16x8x8xf32, #tpu.memory_space<vmem>>, vector<1x1x8x8xf32>
    %12 = vector.shape_cast %11 : vector<1x1x8x8xf32> to vector<8x8xf32>
    %13 = vector.shape_cast %10 : vector<8x8xf32> to vector<1x1x8x8xf32>
    tpu.vector_store %arg4[%c0_12, %c1_13, %c0_14, %c0_15], %13 {strides = array<i32>} : memref<1x16x8x8xf32, #tpu.memory_space<vmem>>, vector<1x1x8x8xf32>,
    %c16 = arith.constant 16 : index
    %c0_16 = arith.constant 0 : index
    %14 = tpu.strided_load %arg5[%c16, %c0_16] {strides = array<i32: 2, 1>} : memref<32x8xf32, #tpu.memory_space<vmem>>, vector<8x8xf32>
    %15 = tpu.transpose %14, [1, 0] : vector<8x8xf32> -> vector<8x8xf32>
    %c0_17 = arith.constant 0 : index
    %c2 = arith.constant 2 : index
    %c0_18 = arith.constant 0 : index
    %c0_19 = arith.constant 0 : index
    %16 = vector.load %arg4[%c0_17, %c2, %c0_18, %c0_19] : memref<1x16x8x8xf32, #tpu.memory_space<vmem>>, vector<1x1x8x8xf32>
    %17 = vector.shape_cast %16 : vector<1x1x8x8xf32> to vector<8x8xf32>
    %18 = vector.shape_cast %15 : vector<8x8xf32> to vector<1x1x8x8xf32>
    tpu.vector_store %arg4[%c0_17, %c2, %c0_18, %c0_19], %18 {strides = array<i32>} : memref<1x16x8x8xf32, #tpu.memory_space<vmem>>, vector<1x1x8x8xf32>,
    %c17 = arith.constant 17 : index
    %c0_20 = arith.constant 0 : index
    %19 = tpu.strided_load %arg5[%c17, %c0_20] {strides = array<i32: 2, 1>} : memref<32x8xf32, #tpu.memory_space<vmem>>, vector<8x8xf32>
    %20 = tpu.transpose %19, [1, 0] : vector<8x8xf32> -> vector<8x8xf32>
    %c0_21 = arith.constant 0 : index
    %c3 = arith.constant 3 : index
    %c0_22 = arith.constant 0 : index
    %c0_23 = arith.constant 0 : index
    %21 = vector.load %arg4[%c0_21, %c3, %c0_22, %c0_23] : memref<1x16x8x8xf32, #tpu.memory_space<vmem>>, vector<1x1x8x8xf32>
    %22 = vector.shape_cast %21 : vector<1x1x8x8xf32> to vector<8x8xf32>
    %23 = vector.shape_cast %20 : vector<8x8xf32> to vector<1x1x8x8xf32>
    tpu.vector_store %arg4[%c0_21, %c3, %c0_22, %c0_23], %23 {strides = array<i32>} : memref<1x16x8x8xf32, #tpu.memory_space<vmem>>, vector<1x1x8x8xf32>,
    %c0_24 = arith.constant 0 : index
    %c1_25 = arith.constant 1 : index
    %c0_26 = arith.constant 0 : index
    %c0_27 = arith.constant 0 : index
    %24 = vector.load %arg3[%c0_24, %c1_25, %c0_26, %c0_27] : memref<1x4x8x32xf32, #tpu.memory_space<vmem>>, vector<1x1x8x32xf32>
    %25 = vector.shape_cast %24 : vector<1x1x8x32xf32> to vector<8x32xf32>
    %26 = tpu.transpose %25, [1, 0] : vector<8x32xf32> -> vector<32x8xf32>
    %c0_28 = arith.constant 0 : index
    %c0_29 = arith.constant 0 : index
    %27 = vector.load %arg5[%c0_28, %c0_29] : memref<32x8xf32, #tpu.memory_space<vmem>>, vector<32x8xf32>
    tpu.vector_store %arg5[%c0_28, %c0_29], %26 {strides = array<i32>} : memref<32x8xf32, #tpu.memory_space<vmem>>, vector<32x8xf32>,
    %c0_30 = arith.constant 0 : index
    %c0_31 = arith.constant 0 : index
    %28 = tpu.strided_load %arg5[%c0_30, %c0_31] {strides = array<i32: 2, 1>} : memref<32x8xf32, #tpu.memory_space<vmem>>, vector<8x8xf32>
    %29 = tpu.transpose %28, [1, 0] : vector<8x8xf32> -> vector<8x8xf32>
    %c0_32 = arith.constant 0 : index
    %c4 = arith.constant 4 : index
    %c0_33 = arith.constant 0 : index
    %c0_34 = arith.constant 0 : index
    %30 = vector.load %arg4[%c0_32, %c4, %c0_33, %c0_34] : memref<1x16x8x8xf32, #tpu.memory_space<vmem>>, vector<1x1x8x8xf32>
    %31 = vector.shape_cast %30 : vector<1x1x8x8xf32> to vector<8x8xf32>
    %32 = vector.shape_cast %29 : vector<8x8xf32> to vector<1x1x8x8xf32>
    tpu.vector_store %arg4[%c0_32, %c4, %c0_33, %c0_34], %32 {strides = array<i32>} : memref<1x16x8x8xf32, #tpu.memory_space<vmem>>, vector<1x1x8x8xf32>,
    %c1_35 = arith.constant 1 : index
    %c0_36 = arith.constant 0 : index
    %33 = tpu.strided_load %arg5[%c1_35, %c0_36] {strides = array<i32: 2, 1>} : memref<32x8xf32, #tpu.memory_space<vmem>>, vector<8x8xf32>
    %34 = tpu.transpose %33, [1, 0] : vector<8x8xf32> -> vector<8x8xf32>
    %c0_37 = arith.constant 0 : index
    %c5 = arith.constant 5 : index
    %c0_38 = arith.constant 0 : index
    %c0_39 = arith.constant 0 : index
    %35 = vector.load %arg4[%c0_37, %c5, %c0_38, %c0_39] : memref<1x16x8x8xf32, #tpu.memory_space<vmem>>, vector<1x1x8x8xf32>
    %36 = vector.shape_cast %35 : vector<1x1x8x8xf32> to vector<8x8xf32>
    %37 = vector.shape_cast %34 : vector<8x8xf32> to vector<1x1x8x8xf32>
    tpu.vector_store %arg4[%c0_37, %c5, %c0_38, %c0_39], %37 {strides = array<i32>} : memref<1x16x8x8xf32, #tpu.memory_space<vmem>>, vector<1x1x8x8xf32>,
    %c16_40 = arith.constant 16 : index
    %c0_41 = arith.constant 0 : index
    %38 = tpu.strided_load %arg5[%c16_40, %c0_41] {strides = array<i32: 2, 1>} : memref<32x8xf32, #tpu.memory_space<vmem>>, vector<8x8xf32>
    %39 = tpu.transpose %38, [1, 0] : vector<8x8xf32> -> vector<8x8xf32>
    %c0_42 = arith.constant 0 : index
    %c6 = arith.constant 6 : index
    %c0_43 = arith.constant 0 : index
    %c0_44 = arith.constant 0 : index
    %40 = vector.load %arg4[%c0_42, %c6, %c0_43, %c0_44] : memref<1x16x8x8xf32, #tpu.memory_space<vmem>>, vector<1x1x8x8xf32>
    %41 = vector.shape_cast %40 : vector<1x1x8x8xf32> to vector<8x8xf32>
    %42 = vector.shape_cast %39 : vector<8x8xf32> to vector<1x1x8x8xf32>
    tpu.vector_store %arg4[%c0_42, %c6, %c0_43, %c0_44], %42 {strides = array<i32>} : memref<1x16x8x8xf32, #tpu.memory_space<vmem>>, vector<1x1x8x8xf32>,
    %c17_45 = arith.constant 17 : index
    %c0_46 = arith.constant 0 : index
    %43 = tpu.strided_load %arg5[%c17_45, %c0_46] {strides = array<i32: 2, 1>} : memref<32x8xf32, #tpu.memory_space<vmem>>, vector<8x8xf32>
    %44 = tpu.transpose %43, [1, 0] : vector<8x8xf32> -> vector<8x8xf32>
    %c0_47 = arith.constant 0 : index
    %c7 = arith.constant 7 : index
    %c0_48 = arith.constant 0 : index
    %c0_49 = arith.constant 0 : index
    %45 = vector.load %arg4[%c0_47, %c7, %c0_48, %c0_49] : memref<1x16x8x8xf32, #tpu.memory_space<vmem>>, vector<1x1x8x8xf32>
    %46 = vector.shape_cast %45 : vector<1x1x8x8xf32> to vector<8x8xf32>
    %47 = vector.shape_cast %44 : vector<8x8xf32> to vector<1x1x8x8xf32>
    tpu.vector_store %arg4[%c0_47, %c7, %c0_48, %c0_49], %47 {strides = array<i32>} : memref<1x16x8x8xf32, #tpu.memory_space<vmem>>, vector<1x1x8x8xf32>,
    %c0_50 = arith.constant 0 : index
    %c2_51 = arith.constant 2 : index
    %c0_52 = arith.constant 0 : index
    %c0_53 = arith.constant 0 : index
    %48 = vector.load %arg3[%c0_50, %c2_51, %c0_52, %c0_53] : memref<1x4x8x32xf32, #tpu.memory_space<vmem>>, vector<1x1x8x32xf32>
    %49 = vector.shape_cast %48 : vector<1x1x8x32xf32> to vector<8x32xf32>
    %50 = tpu.transpose %49, [1, 0] : vector<8x32xf32> -> vector<32x8xf32>
    %c0_54 = arith.constant 0 : index
    %c0_55 = arith.constant 0 : index
    %51 = vector.load %arg5[%c0_54, %c0_55] : memref<32x8xf32, #tpu.memory_space<vmem>>, vector<32x8xf32>
    tpu.vector_store %arg5[%c0_54, %c0_55], %50 {strides = array<i32>} : memref<32x8xf32, #tpu.memory_space<vmem>>, vector<32x8xf32>,
    %c0_56 = arith.constant 0 : index
    %c0_57 = arith.constant 0 : index
    %52 = tpu.strided_load %arg5[%c0_56, %c0_57] {strides = array<i32: 2, 1>} : memref<32x8xf32, #tpu.memory_space<vmem>>, vector<8x8xf32>
    %53 = tpu.transpose %52, [1, 0] : vector<8x8xf32> -> vector<8x8xf32>
    %c0_58 = arith.constant 0 : index
    %c8 = arith.constant 8 : index
    %c0_59 = arith.constant 0 : index
    %c0_60 = arith.constant 0 : index
    %54 = vector.load %arg4[%c0_58, %c8, %c0_59, %c0_60] : memref<1x16x8x8xf32, #tpu.memory_space<vmem>>, vector<1x1x8x8xf32>
    %55 = vector.shape_cast %54 : vector<1x1x8x8xf32> to vector<8x8xf32>
    %56 = vector.shape_cast %53 : vector<8x8xf32> to vector<1x1x8x8xf32>
    tpu.vector_store %arg4[%c0_58, %c8, %c0_59, %c0_60], %56 {strides = array<i32>} : memref<1x16x8x8xf32, #tpu.memory_space<vmem>>, vector<1x1x8x8xf32>,
    %c1_61 = arith.constant 1 : index
    %c0_62 = arith.constant 0 : index
    %57 = tpu.strided_load %arg5[%c1_61, %c0_62] {strides = array<i32: 2, 1>} : memref<32x8xf32, #tpu.memory_space<vmem>>, vector<8x8xf32>
    %58 = tpu.transpose %57, [1, 0] : vector<8x8xf32> -> vector<8x8xf32>
    %c0_63 = arith.constant 0 : index
    %c9 = arith.constant 9 : index
    %c0_64 = arith.constant 0 : index
    %c0_65 = arith.constant 0 : index
    %59 = vector.load %arg4[%c0_63, %c9, %c0_64, %c0_65] : memref<1x16x8x8xf32, #tpu.memory_space<vmem>>, vector<1x1x8x8xf32>
    %60 = vector.shape_cast %59 : vector<1x1x8x8xf32> to vector<8x8xf32>
    %61 = vector.shape_cast %58 : vector<8x8xf32> to vector<1x1x8x8xf32>
    tpu.vector_store %arg4[%c0_63, %c9, %c0_64, %c0_65], %61 {strides = array<i32>} : memref<1x16x8x8xf32, #tpu.memory_space<vmem>>, vector<1x1x8x8xf32>,
    %c16_66 = arith.constant 16 : index
    %c0_67 = arith.constant 0 : index
    %62 = tpu.strided_load %arg5[%c16_66, %c0_67] {strides = array<i32: 2, 1>} : memref<32x8xf32, #tpu.memory_space<vmem>>, vector<8x8xf32>
    %63 = tpu.transpose %62, [1, 0] : vector<8x8xf32> -> vector<8x8xf32>
    %c0_68 = arith.constant 0 : index
    %c10 = arith.constant 10 : index
    %c0_69 = arith.constant 0 : index
    %c0_70 = arith.constant 0 : index
    %64 = vector.load %arg4[%c0_68, %c10, %c0_69, %c0_70] : memref<1x16x8x8xf32, #tpu.memory_space<vmem>>, vector<1x1x8x8xf32>
    %65 = vector.shape_cast %64 : vector<1x1x8x8xf32> to vector<8x8xf32>
    %66 = vector.shape_cast %63 : vector<8x8xf32> to vector<1x1x8x8xf32>
    tpu.vector_store %arg4[%c0_68, %c10, %c0_69, %c0_70], %66 {strides = array<i32>} : memref<1x16x8x8xf32, #tpu.memory_space<vmem>>, vector<1x1x8x8xf32>,
    %c17_71 = arith.constant 17 : index
    %c0_72 = arith.constant 0 : index
    %67 = tpu.strided_load %arg5[%c17_71, %c0_72] {strides = array<i32: 2, 1>} : memref<32x8xf32, #tpu.memory_space<vmem>>, vector<8x8xf32>
    %68 = tpu.transpose %67, [1, 0] : vector<8x8xf32> -> vector<8x8xf32>
    %c0_73 = arith.constant 0 : index
    %c11 = arith.constant 11 : index
    %c0_74 = arith.constant 0 : index
    %c0_75 = arith.constant 0 : index
    %69 = vector.load %arg4[%c0_73, %c11, %c0_74, %c0_75] : memref<1x16x8x8xf32, #tpu.memory_space<vmem>>, vector<1x1x8x8xf32>
    %70 = vector.shape_cast %69 : vector<1x1x8x8xf32> to vector<8x8xf32>
    %71 = vector.shape_cast %68 : vector<8x8xf32> to vector<1x1x8x8xf32>
    tpu.vector_store %arg4[%c0_73, %c11, %c0_74, %c0_75], %71 {strides = array<i32>} : memref<1x16x8x8xf32, #tpu.memory_space<vmem>>, vector<1x1x8x8xf32>,
    %c0_76 = arith.constant 0 : index
    %c3_77 = arith.constant 3 : index
    %c0_78 = arith.constant 0 : index
    %c0_79 = arith.constant 0 : index
    %72 = vector.load %arg3[%c0_76, %c3_77, %c0_78, %c0_79] : memref<1x4x8x32xf32, #tpu.memory_space<vmem>>, vector<1x1x8x32xf32>
    %73 = vector.shape_cast %72 : vector<1x1x8x32xf32> to vector<8x32xf32>
    %74 = tpu.transpose %73, [1, 0] : vector<8x32xf32> -> vector<32x8xf32>
    %c0_80 = arith.constant 0 : index
    %c0_81 = arith.constant 0 : index
    %75 = vector.load %arg5[%c0_80, %c0_81] : memref<32x8xf32, #tpu.memory_space<vmem>>, vector<32x8xf32>
    tpu.vector_store %arg5[%c0_80, %c0_81], %74 {strides = array<i32>} : memref<32x8xf32, #tpu.memory_space<vmem>>, vector<32x8xf32>,
    %c0_82 = arith.constant 0 : index
    %c0_83 = arith.constant 0 : index
    %76 = tpu.strided_load %arg5[%c0_82, %c0_83] {strides = array<i32: 2, 1>} : memref<32x8xf32, #tpu.memory_space<vmem>>, vector<8x8xf32>
    %77 = tpu.transpose %76, [1, 0] : vector<8x8xf32> -> vector<8x8xf32>
    %c0_84 = arith.constant 0 : index
    %c12 = arith.constant 12 : index
    %c0_85 = arith.constant 0 : index
    %c0_86 = arith.constant 0 : index
    %78 = vector.load %arg4[%c0_84, %c12, %c0_85, %c0_86] : memref<1x16x8x8xf32, #tpu.memory_space<vmem>>, vector<1x1x8x8xf32>
    %79 = vector.shape_cast %78 : vector<1x1x8x8xf32> to vector<8x8xf32>
    %80 = vector.shape_cast %77 : vector<8x8xf32> to vector<1x1x8x8xf32>
    tpu.vector_store %arg4[%c0_84, %c12, %c0_85, %c0_86], %80 {strides = array<i32>} : memref<1x16x8x8xf32, #tpu.memory_space<vmem>>, vector<1x1x8x8xf32>,
    %c1_87 = arith.constant 1 : index
    %c0_88 = arith.constant 0 : index
    %81 = tpu.strided_load %arg5[%c1_87, %c0_88] {strides = array<i32: 2, 1>} : memref<32x8xf32, #tpu.memory_space<vmem>>, vector<8x8xf32>
    %82 = tpu.transpose %81, [1, 0] : vector<8x8xf32> -> vector<8x8xf32>
    %c0_89 = arith.constant 0 : index
    %c13 = arith.constant 13 : index
    %c0_90 = arith.constant 0 : index
    %c0_91 = arith.constant 0 : index
    %83 = vector.load %arg4[%c0_89, %c13, %c0_90, %c0_91] : memref<1x16x8x8xf32, #tpu.memory_space<vmem>>, vector<1x1x8x8xf32>
    %84 = vector.shape_cast %83 : vector<1x1x8x8xf32> to vector<8x8xf32>
    %85 = vector.shape_cast %82 : vector<8x8xf32> to vector<1x1x8x8xf32>
    tpu.vector_store %arg4[%c0_89, %c13, %c0_90, %c0_91], %85 {strides = array<i32>} : memref<1x16x8x8xf32, #tpu.memory_space<vmem>>, vector<1x1x8x8xf32>,
    %c16_92 = arith.constant 16 : index
    %c0_93 = arith.constant 0 : index
    %86 = tpu.strided_load %arg5[%c16_92, %c0_93] {strides = array<i32: 2, 1>} : memref<32x8xf32, #tpu.memory_space<vmem>>, vector<8x8xf32>
    %87 = tpu.transpose %86, [1, 0] : vector<8x8xf32> -> vector<8x8xf32>
    %c0_94 = arith.constant 0 : index
    %c14 = arith.constant 14 : index
    %c0_95 = arith.constant 0 : index
    %c0_96 = arith.constant 0 : index
    %88 = vector.load %arg4[%c0_94, %c14, %c0_95, %c0_96] : memref<1x16x8x8xf32, #tpu.memory_space<vmem>>, vector<1x1x8x8xf32>
    %89 = vector.shape_cast %88 : vector<1x1x8x8xf32> to vector<8x8xf32>
    %90 = vector.shape_cast %87 : vector<8x8xf32> to vector<1x1x8x8xf32>
    tpu.vector_store %arg4[%c0_94, %c14, %c0_95, %c0_96], %90 {strides = array<i32>} : memref<1x16x8x8xf32, #tpu.memory_space<vmem>>, vector<1x1x8x8xf32>,
    %c17_97 = arith.constant 17 : index
    %c0_98 = arith.constant 0 : index
    %91 = tpu.strided_load %arg5[%c17_97, %c0_98] {strides = array<i32: 2, 1>} : memref<32x8xf32, #tpu.memory_space<vmem>>, vector<8x8xf32>
    %92 = tpu.transpose %91, [1, 0] : vector<8x8xf32> -> vector<8x8xf32>
    %c0_99 = arith.constant 0 : index
    %c15 = arith.constant 15 : index
    %c0_100 = arith.constant 0 : index
    %c0_101 = arith.constant 0 : index
    %93 = vector.load %arg4[%c0_99, %c15, %c0_100, %c0_101] : memref<1x16x8x8xf32, #tpu.memory_space<vmem>>, vector<1x1x8x8xf32>
    %94 = vector.shape_cast %93 : vector<1x1x8x8xf32> to vector<8x8xf32>
    %95 = vector.shape_cast %92 : vector<8x8xf32> to vector<1x1x8x8xf32>
    tpu.vector_store %arg4[%c0_99, %c15, %c0_100, %c0_101], %95 {strides = array<i32>} : memref<1x16x8x8xf32, #tpu.memory_space<vmem>>, vector<1x1x8x8xf32>,
    return
  }
  func.func @transform_0(%arg0: i32, %arg1: i32, %arg2: i32) -> (i32, i32, i32, i32) {
    %c0_i32 = arith.constant 0 : i32
    %c0_i32_0 = arith.constant 0 : i32
    return %arg0, %arg1, %arg2, %c0_i32 : i32, i32, i32, i32
  }
  func.func @transform_1(%arg0: i32, %arg1: i32, %arg2: i32) -> (i32, i32, i32, i32) {
    %c0_i32 = arith.constant 0 : i32
    %c0_i32_0 = arith.constant 0 : i32
    return %arg0, %arg1, %arg2, %c0_i32 : i32, i32, i32, i32
  }
}

</mosaic_0001>

<bundles_post_ra>
// kernel: tpu_custom_call.1
= control target key start
LH: loop header
LB: loop body
LE: loop exit
PB: predicated region body
PF: predicated region fallthrough
CT: control target
= control target key end

     0   :  { %6 = vsyncpa [#allocation4], 0  ;;  %s1366_s0 = inlined_call_operand.hbm [shape: f32[2,4,8,32], index: 0, kind: input, shape index: {}]   ;;  %s1367_s1 = inlined_call_operand.vmem [shape: f32[2,16,8,8], index: 1, kind: output, shape index: {}]  }
   0x1   :  { %8 = vsyncpa [#allocation4 + $0x1], 0  ;;  %s1192_s6 = smov 0   ;;  %s1194_s7 = smov 0  }
   0x2   :  { %s1196_s8 = smov 0   ;;  %s1198_s9 = smov 0  }
   0x3   :  { %s1200_s10 = smov 0   ;;  %s1202_s11 = smov 0  }
   0x4 LB: > { %s1006_s12 = sadd.s32 4294967295, %s1177_s11   ;;  %s33_s13 = sadd.s32 1, %s1173_s10  ;;  %s1177_s11 = sphi %s1202_s11, %s14_s11   ;;  %s1173_s10 = sphi %s1200_s10, %s1375_s10   ;;  %s1169_s9 = sphi %s1198_s9, %s1374_s9   ;;  %s1165_s8 = sphi %s1196_s8, %s1373_s8   ;;  %s1161_s7 = sphi %s1194_s7, %s1372_s7   ;;  %s1157_s6 = sphi %s1192_s6, %s1371_s6  }
   0x5   : > { %p35_p0 = scmp.ge.s32.totalorder %s33_s13, 2  ;;  %s44_s14 = sadd.s32 1, %s1165_s8 }
   0x6   : > { %p51_p1 = scmp.ne.s32.totalorder %s1165_s8, %s1161_s7  ;;  %p52_p2 = scmp.eq.s32.totalorder %s1177_s11, 0 }
   0x7   : > { %s1377_s13 = smov (%p35_p0, %s33_s13), 0  ;;  %p57_p4 = scmp.ne.s32.totalorder %s1161_s7, %s1157_s6 }
   0x8   : > { %p1228_p3 = por %p52_p2, %p51_p1  ;;  %s37_s16 = ssub.s32 %s1173_s10, %s1377_s13 }
   0x9   : > { %p58_p5 = scmp.eq.s32.totalorder %s1006_s12, 0  ;;  %p42_p6 = scmp.eq.s32.totalorder %s37_s16, 0 }
   0xa   : > { %p1045_p8 = scmp.lt.s32.totalorder %s1177_s11, 2  ;;  %s111_s19 = sand.u32 1, %s1165_s8  }
   0xb   : > { %p1235_p7 = por %p58_p5, %p57_p4  ;;  %s1037_s20 = sshll.u32 %s1173_s10, 9 }
   0xc   : > { %s1241_s18 = scalar_select %p42_p6, %s1165_s8, %s44_s14  }
   0xd   : > { %s1010_s21 = sshll.u32 %s111_s19, 5  ;;  %s1248_s24 = scalar_lea.hbm %s1366_s0, %s1037_s20 }
   0xe   : > { %s115_s25 = scalar_lea.vmem [#allocation3], %s1010_s21  ;;  %p1252_p9 = pnand %p1045_p8, %p1228_p3 }
   0xf   : > { %s125_s26 = sshll.u32 %s115_s25, 4  ;;  %s1258_s28 = scalar_lea.sflag [#allocation4], %s111_s19  ;;  %s1256_s26 = int_to_ptr.vmem [resolvable:$true] %s125_s26 }
  0x10   : > { %s1097_s29 = scalar_lea.hbm %s1248_s24, 512  ;;  %p1099_p11 = pneg %p1252_p9 }
  0x11   : > { %p1098_p10 = scmp.ne.s32.totalorder %s1248_s24, %s1097_s29  ;;  %s1102_s3 = scalar_lea.hbm %s1366_s0, 1024 }
  0x12   : > { %p1103_p0 = scmp.lt.u32.totalorder %s1248_s24, %s1366_s0  ;;  %p1104_p1 = scmp.lt.u32.totalorder %s1102_s3, %s1097_s29 }
  0x13   : > { %p1100_p12 = pnand %p1099_p11, %p1098_p10  ;;  %p1106_p3 = scmp.lt.u32.totalorder %s1097_s29, %s1248_s24 }
  0x14   : > { %p1105_p2 = por %p1104_p1, %p1103_p0 }
  0x15   : > { %p1101_p13 = pneg %p1100_p12 }
  0x16   : > { %p1107_p4 = por %p1106_p3, %p1105_p2 }
  0x18   : > { %p1108_p5 = pnand %p1107_p4, %p1101_p13 }
  0x1a   : > { %1111 = shalt.err (!%p1108_p5)
}
  0x1b   : > { %s1112_s6 = scalar_lea.vmem %s1256_s26, 512  ;;  %s1179_s12 = smov [#allocation3]  }
  0x1c   : > { %p1113_p6 = scmp.ne.s32.totalorder %s1256_s26, %s1112_s6  ;;  %s1117_s14 = sshll.u32 %s1179_s12, 4  ;;  %s1118_s14 = int_to_ptr.vmem [resolvable:$false] %s1117_s14 }
  0x1d   : > { %s1119_s15 = scalar_lea.vmem %s1118_s14, 1024  ;;  %p1120_p12 = scmp.lt.s32.totalorder %s1256_s26, %s1118_s14 }
  0x1e   : > { %p1115_p8 = pnand %p1113_p6, %p1099_p11  ;;  %p1121_p0 = scmp.lt.s32.totalorder %s1119_s15, %s1112_s6 }
  0x20   : > { %p1116_p10 = pneg %p1115_p8  ;;  %p1122_p1 = por %p1121_p0, %p1120_p12 }
  0x22   : > { %p1123_p2 = pnand %p1122_p1, %p1116_p10 }
  0x24   : > { %1126 = shalt.err (!%p1123_p2)
}
  0x25   : > { %s1180_s16 = smov 128   ;;  %s1181_s19 = smov 8  }
  0x26   : > { %1044 = dma.hbm_to_vmem [thread:$0]  (!%p1252_p9), %s1248_s24, 512, %s1256_s26, %s1258_s28, %s1180_s16, %s1180_s16, %s1181_s19  }
  0x27   : > { %p1013_p11 = scmp.ge.s32.totalorder %s1177_s11, 1  ;;  %p133_p13 = scmp.lt.s32.totalorder %s1177_s11, 3 }
  0x29   : > { %p134_p3 = pnand %p1013_p11, %p133_p13 }
  0x2a   : > { %s139_s20 = sand.u32 (!%p134_p3), 1, %s1161_s7  }
  0x2b   : > { %137 = sbr.rel (%p134_p3) target bundleno = 363 (0x16b), region = 24  ;;  %s1014_s21 = sshll.u32 (!%p134_p3), %s139_s20, 5 }
  0x2c   : > { %s140_s22 = scalar_lea.sflag (!%p134_p3), [#allocation4], %s139_s20  ;;  %s143_s23 = scalar_lea.vmem (!%p134_p3), [#allocation3], %s1014_s21 }
  0x32   : > { %1152 = dma.done.wait (%p1235_p7), %s140_s22, 512  }
  0x33   : > { %1154 = vsyncadd (%p1235_p7), %s140_s22, 4294966784  ;;  %v183_v0 = vld [vmem:[%s143_s23] sm:$0xff]  ;;  %v1025_v1 = vld [vmem:[%s143_s23 + $0x10] sm:$0xff]  ;;  %vm216_vm0 = vcmask 64512   ;;  %p171_p7 = scmp.lt.s32.totalorder %s1169_s9, 1 }
  0x34   : > { %184 = vxpose.xlu0.b32.start.end [1/1] (short) (narrow) %v183_v0, 32  ;;  %543 = vxpose.xlu1.b32.start.end [1/1] (short) (narrow) %v1025_v1, 32  ;;  %v1020_v2 = vld [vmem:[%s143_s23 + $0x8] sm:$0xff]  ;;  %v1030_v3 = vld [vmem:[%s143_s23 + $0x18] sm:$0xff] }
  0x35   : > { %s1379_s9 = smov (!%p171_p7, %s1169_s9), 1 }
  0x36   : > { %s1038_s17 = sshll.u32 %s1379_s9, 7 }
  0x37   : > { %s1314_s26 = scalar_lea.vmem %s1367_s1, %s1038_s17 }
  0x41   : > { %365 = vxpose.xlu0.b32.start.end [1/1] (short) (narrow) %v1020_v2, 32  ;;  %721 = vxpose.xlu1.b32.start.end [1/1] (short) (narrow) %v1030_v3, 32 }
  0xb4   : > { %v200_v4 = vpop.trf.xlu0  ;;  %v559_v5 = vpop.trf.xlu1 }
  0xb5   : > { %217 = vst.msk [vmem:[#allocation2] sm:$0xff] %vm216_vm0, %v200_v4 }
  0xb8   : > { %v201_v6 = vpop.trf.xlu0  ;;  %v560_v7 = vpop.trf.xlu1 }
  0xb9   : > { %218 = vst.msk [vmem:[#allocation2 + $0x8] sm:$0xff] %vm216_vm0, %v201_v6 }
  0xbc   : > { %v202_v8 = vpop.trf.xlu0  ;;  %v561_v12 = vpop.trf.xlu1 }
  0xbd   : > { %219 = vst.msk [vmem:[#allocation2 + $0x10] sm:$0xff] %vm216_vm0, %v202_v8 }
  0xc0   : > { %v203_v9 = vpop.trf.xlu0  ;;  %v256_v10 = vld [vmem:[#allocation2 + $0x1] ss:$2 sm:$0xff]  ;;  %v221_v11 = vld [vmem:[#allocation2] ss:$2 sm:$0xff]  ;;  %v562_v14 = vpop.trf.xlu1 }
  0xc1   : > { %220 = vst.msk [vmem:[#allocation2 + $0x18] sm:$0xff] %vm216_vm0, %v203_v9  ;;  %257 = vxpose.xlu1.b32.start.end [1/1] (short) (narrow) %v256_v10, 8  ;;  %222 = vxpose.xlu0.b32.start.end [1/1] (short) (narrow) %v221_v11, 8 }
  0xc4   : > { %v381_v13 = vpop.trf.xlu0  ;;  %v737_v19 = vpop.trf.xlu1 }
  0xc5   : > { %397 = vst.msk [vmem:[#allocation2] sm:$0xff] %vm216_vm0, %v381_v13 }
  0xc8   : > { %v382_v15 = vpop.trf.xlu0  ;;  %v328_v16 = vld [vmem:[#allocation2 + $0x11] ss:$2 sm:$0xff]  ;;  %v292_v17 = vld [vmem:[#allocation2 + $0x10] ss:$2 sm:$0xff]  ;;  %v738_v23 = vpop.trf.xlu1 }
  0xc9   : > { %398 = vst.msk [vmem:[#allocation2 + $0x8] sm:$0xff] %vm216_vm0, %v382_v15  ;;  %329 = vxpose.xlu1.b32.start.end [1/1] (short) (narrow) %v328_v16, 8  ;;  %293 = vxpose.xlu0.b32.start.end [1/1] (short) (narrow) %v292_v17, 8 }
  0xcc   : > { %v383_v18 = vpop.trf.xlu0  ;;  %v739_v26 = vpop.trf.xlu1 }
  0xcd   : > { %399 = vst.msk [vmem:[#allocation2 + $0x10] sm:$0xff] %vm216_vm0, %v383_v18 }
  0xd0   : > { %v384_v20 = vpop.trf.xlu0  ;;  %v436_v21 = vld [vmem:[#allocation2 + $0x1] ss:$2 sm:$0xff]  ;;  %v401_v22 = vld [vmem:[#allocation2] ss:$2 sm:$0xff]  ;;  %v740_v29 = vpop.trf.xlu1 }
  0xd1   : > { %400 = vst.msk [vmem:[#allocation2 + $0x18] sm:$0xff] %vm216_vm0, %v384_v20  ;;  %437 = vxpose.xlu1.b32.start.end [1/1] (short) (narrow) %v436_v21, 8  ;;  %402 = vxpose.xlu0.b32.start.end [1/1] (short) (narrow) %v401_v22, 8  ;;  %575 = vst.msk [vmem:[#allocation2] sm:$0xff] %vm216_vm0, %v559_v5 }
  0xd2   : > { %576 = vst.msk [vmem:[#allocation2 + $0x8] sm:$0xff] %vm216_vm0, %v560_v7 }
  0xd8   : > { %v506_v24 = vld [vmem:[#allocation2 + $0x11] ss:$2 sm:$0xff]  ;;  %v471_v25 = vld [vmem:[#allocation2 + $0x10] ss:$2 sm:$0xff] }
  0xd9   : > { %v614_v27 = vld [vmem:[#allocation2 + $0x1] ss:$2 sm:$0xff]  ;;  %507 = vxpose.xlu1.b32.start.end [1/1] (short) (narrow) %v506_v24, 8  ;;  %472 = vxpose.xlu0.b32.start.end [1/1] (short) (narrow) %v471_v25, 8  ;;  %577 = vst.msk [vmem:[#allocation2 + $0x10] sm:$0xff] %vm216_vm0, %v561_v12  ;;  %578 = vst.msk [vmem:[#allocation2 + $0x18] sm:$0xff] %vm216_vm0, %v562_v14 }
  0xda   : > { %v579_v28 = vld [vmem:[#allocation2] ss:$2 sm:$0xff] }
  0xdb   : > { %753 = vst.msk [vmem:[#allocation2] sm:$0xff] %vm216_vm0, %v737_v19  ;;  %754 = vst.msk [vmem:[#allocation2 + $0x8] sm:$0xff] %vm216_vm0, %v738_v23 }
  0xdd   : > { %615 = vxpose.xlu1.b32.start.end [1/1] (short) (narrow) %v614_v27, 8  ;;  %580 = vxpose.xlu0.b32.start.end [1/1] (short) (narrow) %v579_v28, 8 }
  0xe0   : > { %v684_v30 = vld [vmem:[#allocation2 + $0x11] ss:$2 sm:$0xff]  ;;  %v649_v31 = vld [vmem:[#allocation2 + $0x10] ss:$2 sm:$0xff] }
  0xe1   : > { %685 = vxpose.xlu1.b32.start.end [1/1] (short) (narrow) %v684_v30, 8  ;;  %650 = vxpose.xlu0.b32.start.end [1/1] (short) (narrow) %v649_v31, 8  ;;  %755 = vst.msk [vmem:[#allocation2 + $0x10] sm:$0xff] %vm216_vm0, %v739_v26  ;;  %756 = vst.msk [vmem:[#allocation2 + $0x18] sm:$0xff] %vm216_vm0, %v740_v29 }
  0xe2   : > { %v792_v32 = vld [vmem:[#allocation2 + $0x1] ss:$2 sm:$0xff]  ;;  %v757_v33 = vld [vmem:[#allocation2] ss:$2 sm:$0xff] }
  0xe5   : > { %793 = vxpose.xlu1.b32.start.end [1/1] (short) (narrow) %v792_v32, 8  ;;  %758 = vxpose.xlu0.b32.start.end [1/1] (short) (narrow) %v757_v33, 8 }
  0xe8   : > { %v862_v34 = vld [vmem:[#allocation2 + $0x11] ss:$2 sm:$0xff]  ;;  %v827_v35 = vld [vmem:[#allocation2 + $0x10] ss:$2 sm:$0xff] }
  0xe9   : > { %863 = vxpose.xlu1.b32.start.end [1/1] (short) (narrow) %v862_v34, 8  ;;  %828 = vxpose.xlu0.b32.start.end [1/1] (short) (narrow) %v827_v35, 8 }
 0x141   : > { %v273_v36 = vpop.trf.xlu1  ;;  %v238_v37 = vpop.trf.xlu0 }
 0x142   : > { %1017 = vst.msk [vmem:[%s1314_s26 + $0x8] sm:$0xff] %vm216_vm0, %v273_v36  ;;  %254 = vst.msk [vmem:[%s1314_s26] sm:$0xff] %vm216_vm0, %v238_v37 }
 0x149   : > { %v345_v38 = vpop.trf.xlu1  ;;  %v309_v39 = vpop.trf.xlu0 }
 0x14a   : > { %1019 = vst.msk [vmem:[%s1314_s26 + $0x18] sm:$0xff] %vm216_vm0, %v345_v38  ;;  %1018 = vst.msk [vmem:[%s1314_s26 + $0x10] sm:$0xff] %vm216_vm0, %v309_v39 }
 0x151   : > { %v453_v40 = vpop.trf.xlu1  ;;  %v418_v41 = vpop.trf.xlu0 }
 0x152   : > { %1022 = vst.msk [vmem:[%s1314_s26 + $0x28] sm:$0xff] %vm216_vm0, %v453_v40  ;;  %1021 = vst.msk [vmem:[%s1314_s26 + $0x20] sm:$0xff] %vm216_vm0, %v418_v41 }
 0x159   : > { %v523_v42 = vpop.trf.xlu1  ;;  %v488_v43 = vpop.trf.xlu0 }
 0x15a   : > { %1024 = vst.msk [vmem:[%s1314_s26 + $0x38] sm:$0xff] %vm216_vm0, %v523_v42  ;;  %1023 = vst.msk [vmem:[%s1314_s26 + $0x30] sm:$0xff] %vm216_vm0, %v488_v43 }
 0x15d   : > { %v631_v44 = vpop.trf.xlu1  ;;  %v596_v45 = vpop.trf.xlu0 }
 0x15e   : > { %1027 = vst.msk [vmem:[%s1314_s26 + $0x48] sm:$0xff] %vm216_vm0, %v631_v44  ;;  %1026 = vst.msk [vmem:[%s1314_s26 + $0x40] sm:$0xff] %vm216_vm0, %v596_v45 }
 0x161   : > { %v701_v46 = vpop.trf.xlu1  ;;  %v666_v47 = vpop.trf.xlu0 }
 0x162   : > { %1029 = vst.msk [vmem:[%s1314_s26 + $0x58] sm:$0xff] %vm216_vm0, %v701_v46  ;;  %1028 = vst.msk [vmem:[%s1314_s26 + $0x50] sm:$0xff] %vm216_vm0, %v666_v47 }
 0x165   : > { %v809_v48 = vpop.trf.xlu1  ;;  %v774_v49 = vpop.trf.xlu0 }
 0x166   : > { %1032 = vst.msk [vmem:[%s1314_s26 + $0x68] sm:$0xff] %vm216_vm0, %v809_v48  ;;  %1031 = vst.msk [vmem:[%s1314_s26 + $0x60] sm:$0xff] %vm216_vm0, %v774_v49 }
 0x169   : > { %v879_v50 = vpop.trf.xlu1  ;;  %v844_v51 = vpop.trf.xlu0 }
 0x16a   : > { %1034 = vst.msk [vmem:[%s1314_s26 + $0x78] sm:$0xff] %vm216_vm0, %v879_v50  ;;  %1033 = vst.msk [vmem:[%s1314_s26 + $0x70] sm:$0xff] %vm216_vm0, %v844_v51 }
 0x16b PF: > { %s14_s11 = sadd.s32 1, %s1177_s11   ;;  %s1371_s6 = smov %s1161_s7 }
 0x16c   : > { %p11_p9 = scmp.ge.s32.totalorder %s14_s11, 4   ;;  %s1372_s7 = smov %s1165_s8 }
 0x16d   : > { %s1373_s8 = smov %s1241_s18  ;;  %s1374_s9 = smov %s1173_s10 }
 0x16e   : > { %s1375_s10 = smov %s1377_s13  ;;  %13 = sbr.rel (!%p11_p9) target bundleno = 4 (0x4), region = 85 }
 0x175   :  { %933 = vsyncpa [#allocation4], 1 }
 0x176   :  { %935 = vsyncpa [#allocation4 + $0x1], 1 }

</bundles_post_ra>
